<compile_context>
chip_gen: v7x
topology: tpu7x:2x2x1
jax: 0.10.0
libtpu: 0.0.40
codegen_flags: <defaults>
</compile_context>

<pallas_src>
import functools

import jax
import jax.numpy as jnp
import numpy as np
from jax.experimental import pallas as pl
from jax.experimental.pallas import tpu as pltpu

LN_EPS = 1e-5  # PyTorch nn.LayerNorm default


# --------------------------------- kernel ----------------------------------- #
def resff_kernel(x_ref, mask_ref, w1_ref, b1_ref, w2_ref, b2_ref,
                 g_ref, beta_ref, out_ref, acc_ref):
    f = pl.program_id(2)

    @pl.when(f == 0)
    def _():
        acc_ref[...] = jnp.zeros_like(acc_ref)

    x = x_ref[0]                                              # (TL, D) f32, resident across f

    # FF1 tile: (TL, D) @ (D, TF) + b1 -> ReLU     (bf16 operands, f32 accumulation)
    h = jnp.maximum(
        jnp.dot(x.astype(jnp.bfloat16), w1_ref[...],
                preferred_element_type=jnp.float32) + b1_ref[...], 0.0)

    # FF2 partial: (TL, TF) @ (TF, D), accumulated over FF tiles in f32 VMEM scratch
    acc_ref[...] += jnp.dot(h.astype(jnp.bfloat16), w2_ref[...],
                            preferred_element_type=jnp.float32)

    @pl.when(f == pl.num_programs(2) - 1)
    def _():
        ff = (acc_ref[...] + b2_ref[...]) * mask_ref[0]       # mask broadcast (TL,1)->(TL,D)
        z = x + ff                                            # residual
        # one-pass LayerNorm statistics
        mu = jnp.mean(z, axis=-1, keepdims=True)
        ms = jnp.mean(z * z, axis=-1, keepdims=True)
        var = jnp.maximum(ms - mu * mu, 0.0)
        out_ref[0] = (z - mu) * jax.lax.rsqrt(var + LN_EPS) * g_ref[...] + beta_ref[...]


# -------------------------------- wrapper ------------------------------------ #
def resff(x, mask, params, *, tile_l=None, tile_f=None):
    """ResFF forward: LayerNorm(x + mask * Conv1x1(ReLU(Conv1x1(x))))."""
    B, L, D = x.shape
    FF = params["w1"].shape[-1]

    if tile_l is None:
        tile_l = L if L <= 128 else 128
    if tile_f is None:
        tile_f = FF if FF <= 512 else 512
    assert L % tile_l == 0 and FF % tile_f == 0
    assert tile_l == L or tile_l % 8 == 0

    w1 = params["w1"].astype(jnp.bfloat16)                    # (D, FF)
    w2 = params["w2"].astype(jnp.bfloat16)                    # (FF, D)
    b1 = params["b1"].reshape(1, FF).astype(jnp.float32)
    b2 = params["b2"].reshape(1, D).astype(jnp.float32)
    g = params["ln_g"].reshape(1, D).astype(jnp.float32)
    beta = params["ln_b"].reshape(1, D).astype(jnp.float32)

    if mask is None:
        mask3 = jnp.ones((B, L, 1), jnp.float32)
    else:
        mask3 = mask.astype(jnp.float32)[:, :, None]          # (B, L, 1)

    grid = (B, L // tile_l, FF // tile_f)
    in_specs = [
        pl.BlockSpec((1, tile_l, D), lambda b, l, f: (b, l, 0)),   # x (resident over f)
        pl.BlockSpec((1, tile_l, 1), lambda b, l, f: (b, l, 0)),   # mask
        pl.BlockSpec((D, tile_f), lambda b, l, f: (0, f)),         # W1 column tile
        pl.BlockSpec((1, tile_f), lambda b, l, f: (0, f)),         # b1 tile
        pl.BlockSpec((tile_f, D), lambda b, l, f: (f, 0)),         # W2 row tile
        pl.BlockSpec((1, D), lambda b, l, f: (0, 0)),              # b2
        pl.BlockSpec((1, D), lambda b, l, f: (0, 0)),              # LN gamma
        pl.BlockSpec((1, D), lambda b, l, f: (0, 0)),              # LN beta
    ]

    return pl.pallas_call(
        resff_kernel,
        out_shape=jax.ShapeDtypeStruct((B, L, D), jnp.float32),
        grid=grid,
        in_specs=in_specs,
        out_specs=pl.BlockSpec((1, tile_l, D), lambda b, l, f: (b, l, 0)),
        scratch_shapes=[pltpu.VMEM((tile_l, D), jnp.float32)],      # FF2 accumulator
        compiler_params=pltpu.CompilerParams(
            dimension_semantics=("parallel", "parallel", "arbitrary"),
            vmem_limit_bytes=48 * 1024 * 1024),
    )(x, mask3, w1, b1, w2, b2, g, beta)


# --------------------------- pure-JAX reference ------------------------------ #
def _mm(a, b):
    # bf16 operands, f32 accumulation (mirrors the kernel's matmul dtype policy)
    return jax.lax.dot_general(
        a.astype(jnp.bfloat16), b.astype(jnp.bfloat16),
        (((a.ndim - 1,), (0,)), ((), ())),
        preferred_element_type=jnp.float32)


def resff_ref(x, mask, p):
    h = jnp.maximum(_mm(x, p["w1"]) + p["b1"].reshape(1, 1, -1), 0.0)
    ff = _mm(h, p["w2"]) + p["b2"].reshape(1, 1, -1)
    if mask is not None:
        ff = ff * mask.astype(jnp.float32)[:, :, None]
    z = x + ff
    mu = z.mean(-1, keepdims=True)
    var = ((z - mu) ** 2).mean(-1, keepdims=True)
    return ((z - mu) / jnp.sqrt(var + LN_EPS)
            * p["ln_g"].reshape(1, 1, -1) + p["ln_b"].reshape(1, 1, -1))


# ----------------------------------- main ------------------------------------ #
if __name__ == "__main__":
    # small, lane-dense demo shapes: D and FF are multiples of 128
    B, L, D, FF = 2, 16, 256, 512

    key = jax.random.PRNGKey(0)
    kx, k1, kb1, k2, kb2 = jax.random.split(key, 5)
    x = jax.random.normal(kx, (B, L, D), jnp.float32)
    mask = jnp.ones((B, L), jnp.float32).at[1, 12:].set(0.0)

    params = dict(
        w1=0.1 * jax.random.normal(k1, (D, FF), jnp.float32),   # conv1d_in.weight[:, :, 0].T
        b1=0.1 * jax.random.normal(kb1, (FF,), jnp.float32),
        w2=0.1 * jax.random.normal(k2, (FF, D), jnp.float32),   # conv1d_out.weight[:, :, 0].T
        b2=0.1 * jax.random.normal(kb2, (D,), jnp.float32),
        ln_g=jnp.ones((D,), jnp.float32),
        ln_b=jnp.zeros((D,), jnp.float32),
    )

    out = resff(x, mask, params, tile_l=8, tile_f=256)
    out = jax.block_until_ready(out)
    assert out.shape == (B, L, D)
    np.testing.assert_allclose(np.asarray(out), np.asarray(resff_ref(x, mask, params)),
                               rtol=1e-2, atol=1e-2)

    # mask=None branch of ResFF.forward
    out2 = jax.block_until_ready(resff(x, None, params, tile_l=8, tile_f=256))
    np.testing.assert_allclose(np.asarray(out2), np.asarray(resff_ref(x, None, params)),
                               rtol=1e-2, atol=1e-2)

    print("KERNEL_OK")
</pallas_src>

<mosaic_0001>
module attributes {stable_mosaic.version = 11 : i64} {
  func.func @resff_kernel(%arg0: i32, %arg1: i32, %arg2: i32, %arg3: memref<1x8x256xf32, #tpu.memory_space<vmem>>, %arg4: memref<1x8x1xf32, #tpu.memory_space<vmem>>, %arg5: memref<256x256xbf16, #tpu.memory_space<vmem>>, %arg6: memref<1x256xf32, #tpu.memory_space<vmem>>, %arg7: memref<256x256xbf16, #tpu.memory_space<vmem>>, %arg8: memref<1x256xf32, #tpu.memory_space<vmem>>, %arg9: memref<1x256xf32, #tpu.memory_space<vmem>>, %arg10: memref<1x256xf32, #tpu.memory_space<vmem>>, %arg11: memref<1x8x256xf32, #tpu.memory_space<vmem>>, %arg12: memref<8x256xf32, #tpu.memory_space<vmem>>) attributes {dimension_semantics = [#tpu.dimension_semantics<parallel>, #tpu.dimension_semantics<parallel>, #tpu.dimension_semantics<arbitrary>], iteration_bounds = array<i64: 2, 2, 2>, scalar_prefetch = 0 : i64, scratch_operands = 1 : i64, tpu.core_type = #tpu.core_type<tc>, window_params = [{transform_indices = @transform_0, window_bounds = array<i64: 1, 8, 256>}, {transform_indices = @transform_1, window_bounds = array<i64: 1, 8, 1>}, {transform_indices = @transform_2, window_bounds = array<i64: 256, 256>}, {transform_indices = @transform_3, window_bounds = array<i64: 1, 256>}, {transform_indices = @transform_4, window_bounds = array<i64: 256, 256>}, {pipeline_mode = #tpu.pipeline_mode<synchronous>, transform_indices = @transform_5, window_bounds = array<i64: 1, 256>}, {pipeline_mode = #tpu.pipeline_mode<synchronous>, transform_indices = @transform_6, window_bounds = array<i64: 1, 256>}, {pipeline_mode = #tpu.pipeline_mode<synchronous>, transform_indices = @transform_7, window_bounds = array<i64: 1, 256>}, {transform_indices = @transform_8, window_bounds = array<i64: 1, 8, 256>}]} {
    %c0_i32 = arith.constant 0 : i32
    %0 = arith.cmpi eq, %arg2, %c0_i32 : i32
    %1 = arith.extui %0 : i1 to i32
    %c0_i32_0 = arith.constant 0 : i32
    %2 = arith.cmpi ne, %1, %c0_i32_0 : i32
    scf.if %2 {
      %cst_16 = arith.constant 0.000000e+00 : f32
      %22 = vector.broadcast %cst_16 : f32 to vector<8x256xf32>
      %c0_17 = arith.constant 0 : index
      %c0_18 = arith.constant 0 : index
      %23 = vector.load %arg12[%c0_17, %c0_18] : memref<8x256xf32, #tpu.memory_space<vmem>>, vector<8x256xf32>
      tpu.vector_store %arg12[%c0_17, %c0_18], %22 {strides = array<i32>} : memref<8x256xf32, #tpu.memory_space<vmem>>, vector<8x256xf32>,
    } else {
    }
    %c0 = arith.constant 0 : index
    %c0_1 = arith.constant 0 : index
    %c0_2 = arith.constant 0 : index
    %3 = vector.load %arg3[%c0, %c0_1, %c0_2] : memref<1x8x256xf32, #tpu.memory_space<vmem>>, vector<1x8x256xf32>
    %4 = vector.shape_cast %3 : vector<1x8x256xf32> to vector<8x256xf32>
    %5 = arith.truncf %4 : vector<8x256xf32> to vector<8x256xbf16>
    %c0_3 = arith.constant 0 : index
    %c0_4 = arith.constant 0 : index
    %6 = vector.load %arg5[%c0_3, %c0_4] : memref<256x256xbf16, #tpu.memory_space<vmem>>, vector<256x256xbf16>
    %cst = arith.constant dense<0.000000e+00> : vector<8x256xf32>
    %7 = tpu.matmul %5, %6, %cst {dimension_numbers = #tpu.dot_dimension_numbers<[1], [0], [0], [1], [0, 0, 1, 1], [], []>} : vector<8x256xbf16>, vector<256x256xbf16>, vector<8x256xf32> -> vector<8x256xf32>
    %c0_5 = arith.constant 0 : index
    %c0_6 = arith.constant 0 : index
    %8 = vector.load %arg6[%c0_5, %c0_6] : memref<1x256xf32, #tpu.memory_space<vmem>>, vector<1x256xf32>
    %9 = vector.broadcast %8 : vector<1x256xf32> to vector<8x256xf32>
    %10 = arith.addf %7, %9 : vector<8x256xf32>
    %cst_7 = arith.constant 0.000000e+00 : f32
    %11 = vector.broadcast %cst_7 : f32 to vector<8x256xf32>
    %12 = arith.maximumf %10, %11 : vector<8x256xf32>
    %c0_8 = arith.constant 0 : index
    %c0_9 = arith.constant 0 : index
    %13 = vector.load %arg12[%c0_8, %c0_9] : memref<8x256xf32, #tpu.memory_space<vmem>>, vector<8x256xf32>
    %14 = arith.truncf %12 : vector<8x256xf32> to vector<8x256xbf16>
    %c0_10 = arith.constant 0 : index
    %c0_11 = arith.constant 0 : index
    %15 = vector.load %arg7[%c0_10, %c0_11] : memref<256x256xbf16, #tpu.memory_space<vmem>>, vector<256x256xbf16>
    %cst_12 = arith.constant dense<0.000000e+00> : vector<8x256xf32>
    %16 = tpu.matmul %14, %15, %cst_12 {dimension_numbers = #tpu.dot_dimension_numbers<[1], [0], [0], [1], [0, 0, 1, 1], [], []>} : vector<8x256xbf16>, vector<256x256xbf16>, vector<8x256xf32> -> vector<8x256xf32>
    %17 = arith.addf %13, %16 : vector<8x256xf32>
    %c0_13 = arith.constant 0 : index
    %c0_14 = arith.constant 0 : index
    %18 = vector.load %arg12[%c0_13, %c0_14] : memref<8x256xf32, #tpu.memory_space<vmem>>, vector<8x256xf32>
    tpu.vector_store %arg12[%c0_13, %c0_14], %17 {strides = array<i32>} : memref<8x256xf32, #tpu.memory_space<vmem>>, vector<8x256xf32>,
    %c1_i32 = arith.constant 1 : i32
    %19 = arith.cmpi eq, %arg2, %c1_i32 : i32
    %20 = arith.extui %19 : i1 to i32
    %c0_i32_15 = arith.constant 0 : i32
    %21 = arith.cmpi ne, %20, %c0_i32_15 : i32
    scf.if %21 {
      %c0_16 = arith.constant 0 : index
      %c0_17 = arith.constant 0 : index
      %22 = vector.load %arg12[%c0_16, %c0_17] : memref<8x256xf32, #tpu.memory_space<vmem>>, vector<8x256xf32>
      %c0_18 = arith.constant 0 : index
      %c0_19 = arith.constant 0 : index
      %23 = vector.load %arg8[%c0_18, %c0_19] : memref<1x256xf32, #tpu.memory_space<vmem>>, vector<1x256xf32>
      %24 = vector.broadcast %23 : vector<1x256xf32> to vector<8x256xf32>
      %25 = arith.addf %22, %24 : vector<8x256xf32>
      %c0_20 = arith.constant 0 : index
      %c0_21 = arith.constant 0 : index
      %c0_22 = arith.constant 0 : index
      %26 = vector.load %arg4[%c0_20, %c0_21, %c0_22] : memref<1x8x1xf32, #tpu.memory_space<vmem>>, vector<1x8x1xf32>
      %27 = vector.shape_cast %26 : vector<1x8x1xf32> to vector<8x1xf32>
      %28 = vector.broadcast %27 : vector<8x1xf32> to vector<8x256xf32>
      %29 = arith.mulf %25, %28 : vector<8x256xf32>
      %30 = arith.addf %4, %29 : vector<8x256xf32>
      %cst_23 = arith.constant dense<0.000000e+00> : vector<8xf32>
      %31 = vector.multi_reduction <add>, %30, %cst_23 [1] : vector<8x256xf32> to vector<8xf32>
      %32 = vector.shape_cast %31 : vector<8xf32> to vector<8x1xf32>
      %cst_24 = arith.constant 2.560000e+02 : f32
      %33 = vector.broadcast %cst_24 : f32 to vector<8x1xf32>
      %34 = arith.divf %32, %33 : vector<8x1xf32>
      %35 = arith.mulf %30, %30 : vector<8x256xf32>
      %cst_25 = arith.constant dense<0.000000e+00> : vector<8xf32>
      %36 = vector.multi_reduction <add>, %35, %cst_25 [1] : vector<8x256xf32> to vector<8xf32>
      %37 = vector.shape_cast %36 : vector<8xf32> to vector<8x1xf32>
      %cst_26 = arith.constant 2.560000e+02 : f32
      %38 = vector.broadcast %cst_26 : f32 to vector<8x1xf32>
      %39 = arith.divf %37, %38 : vector<8x1xf32>
      %40 = arith.mulf %34, %34 : vector<8x1xf32>
      %41 = arith.subf %39, %40 : vector<8x1xf32>
      %cst_27 = arith.constant 0.000000e+00 : f32
      %42 = vector.broadcast %cst_27 : f32 to vector<8x1xf32>
      %43 = arith.maximumf %41, %42 : vector<8x1xf32>
      %44 = vector.broadcast %34 : vector<8x1xf32> to vector<8x256xf32>
      %45 = arith.subf %30, %44 : vector<8x256xf32>
      %cst_28 = arith.constant 9.99999974E-6 : f32
      %46 = vector.broadcast %cst_28 : f32 to vector<8x1xf32>
      %47 = arith.addf %43, %46 : vector<8x1xf32>
      %48 = math.rsqrt %47 : vector<8x1xf32>
      %49 = vector.broadcast %48 : vector<8x1xf32> to vector<8x256xf32>
      %50 = arith.mulf %45, %49 : vector<8x256xf32>
      %c0_29 = arith.constant 0 : index
      %c0_30 = arith.constant 0 : index
      %51 = vector.load %arg9[%c0_29, %c0_30] : memref<1x256xf32, #tpu.memory_space<vmem>>, vector<1x256xf32>
      %52 = vector.broadcast %51 : vector<1x256xf32> to vector<8x256xf32>
      %53 = arith.mulf %50, %52 : vector<8x256xf32>
      %c0_31 = arith.constant 0 : index
      %c0_32 = arith.constant 0 : index
      %54 = vector.load %arg10[%c0_31, %c0_32] : memref<1x256xf32, #tpu.memory_space<vmem>>, vector<1x256xf32>
      %55 = vector.broadcast %54 : vector<1x256xf32> to vector<8x256xf32>
      %56 = arith.addf %53, %55 : vector<8x256xf32>
      %c0_33 = arith.constant 0 : index
      %c0_34 = arith.constant 0 : index
      %c0_35 = arith.constant 0 : index
      %57 = vector.load %arg11[%c0_33, %c0_34, %c0_35] : memref<1x8x256xf32, #tpu.memory_space<vmem>>, vector<1x8x256xf32>
      %58 = vector.shape_cast %57 : vector<1x8x256xf32> to vector<8x256xf32>
      %59 = vector.shape_cast %56 : vector<8x256xf32> to vector<1x8x256xf32>
      tpu.vector_store %arg11[%c0_33, %c0_34, %c0_35], %59 {strides = array<i32>} : memref<1x8x256xf32, #tpu.memory_space<vmem>>, vector<1x8x256xf32>,
    } else {
    }
    return
  }
  func.func @transform_0(%arg0: i32, %arg1: i32, %arg2: i32) -> (i32, i32, i32) {
    %c0_i32 = arith.constant 0 : i32
    %c0_i32_0 = arith.constant 0 : i32
    return %arg0, %arg1, %c0_i32 : i32, i32, i32
  }
  func.func @transform_1(%arg0: i32, %arg1: i32, %arg2: i32) -> (i32, i32, i32) {
    %c0_i32 = arith.constant 0 : i32
    %c0_i32_0 = arith.constant 0 : i32
    return %arg0, %arg1, %c0_i32 : i32, i32, i32
  }
  func.func @transform_2(%arg0: i32, %arg1: i32, %arg2: i32) -> (i32, i32) {
    %c0_i32 = arith.constant 0 : i32
    %c0_i32_0 = arith.constant 0 : i32
    return %c0_i32, %arg2 : i32, i32
  }
  func.func @transform_3(%arg0: i32, %arg1: i32, %arg2: i32) -> (i32, i32) {
    %c0_i32 = arith.constant 0 : i32
    %c0_i32_0 = arith.constant 0 : i32
    return %c0_i32, %arg2 : i32, i32
  }
  func.func @transform_4(%arg0: i32, %arg1: i32, %arg2: i32) -> (i32, i32) {
    %c0_i32 = arith.constant 0 : i32
    %c0_i32_0 = arith.constant 0 : i32
    return %arg2, %c0_i32 : i32, i32
  }
  func.func @transform_5(%arg0: i32, %arg1: i32, %arg2: i32) -> (i32, i32) {
    %c0_i32 = arith.constant 0 : i32
    %c0_i32_0 = arith.constant 0 : i32
    %c0_i32_1 = arith.constant 0 : i32
    return %c0_i32, %c0_i32_0 : i32, i32
  }
  func.func @transform_6(%arg0: i32, %arg1: i32, %arg2: i32) -> (i32, i32) {
    %c0_i32 = arith.constant 0 : i32
    %c0_i32_0 = arith.constant 0 : i32
    %c0_i32_1 = arith.constant 0 : i32
    return %c0_i32, %c0_i32_0 : i32, i32
  }
  func.func @transform_7(%arg0: i32, %arg1: i32, %arg2: i32) -> (i32, i32) {
    %c0_i32 = arith.constant 0 : i32
    %c0_i32_0 = arith.constant 0 : i32
    %c0_i32_1 = arith.constant 0 : i32
    return %c0_i32, %c0_i32_0 : i32, i32
  }
  func.func @transform_8(%arg0: i32, %arg1: i32, %arg2: i32) -> (i32, i32, i32) {
    %c0_i32 = arith.constant 0 : i32
    %c0_i32_0 = arith.constant 0 : i32
    return %arg0, %arg1, %c0_i32 : i32, i32, i32
  }
}

</mosaic_0001>

<bundles_post_ra>
// kernel: tpu_custom_call.1
= control target key start
LH: loop header
LB: loop body
LE: loop exit
PB: predicated region body
PF: predicated region fallthrough
CT: control target
= control target key end

     0   :  { %s2360_s0 = inlined_call_operand.hbm [shape: f32[2,16,256], index: 0, kind: input, shape index: {}]   ;;  %s2361_s1 = inlined_call_operand.vmem [shape: f32[2,16,1], index: 1, kind: input, shape index: {}]   ;;  %s2362_s2 = inlined_call_operand.hbm [shape: bf16[256,512], index: 2, kind: input, shape index: {}]   ;;  %s2363_s3 = inlined_call_operand.vmem [shape: f32[1,512], index: 3, kind: input, shape index: {}]   ;;  %s2364_s4 = inlined_call_operand.hbm [shape: bf16[512,256], index: 4, kind: input, shape index: {}]   ;;  %s2365_s5 = inlined_call_operand.vmem [shape: f32[1,256], index: 5, kind: input, shape index: {}]   ;;  %s2366_s6 = inlined_call_operand.vmem [shape: f32[1,256], index: 6, kind: input, shape index: {}]   ;;  %s2367_s7 = inlined_call_operand.vmem [shape: f32[1,256], index: 7, kind: input, shape index: {}]   ;;  %s2368_s8 = inlined_call_operand.hbm [shape: f32[2,16,256], index: 8, kind: output, shape index: {}]  }
   0x1   :  { %2390 = sst [smem:[#allocation25_spill]] %s2360_s0 }
   0x2   :  { %2391 = sst [smem:[#allocation26_spill]] %s2361_s1 }
   0x3   :  { %2392 = sst [smem:[#allocation27_spill]] %s2362_s2 }
   0x4   :  { %2393 = sst [smem:[#allocation28_spill]] %s2363_s3 }
   0x5   :  { %2394 = sst [smem:[#allocation29_spill]] %s2365_s5 }
   0x6   :  { %2395 = sst [smem:[#allocation30_spill]] %s2366_s6 }
   0x7   :  { %2396 = sst [smem:[#allocation31_spill]] %s2367_s7 }
   0x8   :  { %2397 = sst [smem:[#allocation32_spill]] %s2368_s8 }
   0x9   :  { %13 = vsyncpa [#allocation4], 0 }
   0xa   :  { %15 = vsyncpa [#allocation4 + $0x1], 0 }
   0xb   :  { %16 = vsyncpa [#allocation7], 0 }
   0xc   :  { %18 = vsyncpa [#allocation7 + $0x1], 0 }
   0xd   :  { %19 = vsyncpa [#allocation5], 0 }
   0xe   :  { %21 = vsyncpa [#allocation5 + $0x1], 0  ;;  %s1853_s27 = smov 0   ;;  %s1855_s28 = smov 0  }
   0xf   :  { %s1857_s29 = smov 0   ;;  %s1859_s30 = smov 0  }
  0x10   :  { %s1861_s9 = smov 0   ;;  %s1863_s10 = smov 0  }
  0x11   :  { %s1865_s11 = smov 0   ;;  %s1867_s12 = smov 0  }
  0x12   :  { %s1869_s13 = smov 0   ;;  %s1871_s14 = smov 0  }
  0x13   :  { %s1873_s15 = smov 0   ;;  %s1875_s16 = smov 0  }
  0x14   :  { %s1877_s17 = smov 0  }
  0x15 LB: > { %2398 = sst [smem:[#allocation13_spill]] %s1753_s28  ;;  %p63_p0 = scmp.eq.s32.totalorder %s1797_s17, 0  ;;  %s1797_s17 = sphi %s1877_s17, %s27_s17   ;;  %s1793_s16 = sphi %s1875_s16, %s2454_s16   ;;  %s1789_s15 = sphi %s1873_s15, %s2461_s15   ;;  %s1785_s14 = sphi %s1871_s14, %s2460_s14   ;;  %s1781_s13 = sphi %s1869_s13, %s2451_s13   ;;  %s1777_s12 = sphi %s1867_s12, %s2459_s12   ;;  %s1773_s11 = sphi %s1865_s11, %s2458_s11   ;;  %s1769_s10 = sphi %s1863_s10, %s2457_s10   ;;  %s1765_s9 = sphi %s1861_s9, %s2456_s9   ;;  %s1761_s30 = sphi %s1859_s30, %s2455_s30   ;;  %s1757_s29 = sphi %s1857_s29, %s2450_s29   ;;  %s1753_s28 = sphi %s1855_s28, %s2449_s28   ;;  %s1749_s27 = sphi %s1853_s27, %s2448_s27  }
  0x16   : > { %2399 = sst [smem:[#allocation14_spill]] %s1757_s29  ;;  %p116_p1 = scmp.ne.s32.totalorder %s1757_s29, %s1753_s28 }
  0x17   : > { %2400 = sst [smem:[#allocation15_spill]] %s1773_s11  ;;  %p2370_p2 = scmp.lt.s32.totalorder %s1797_s17, 8 }
  0x18   : > { %2401 = sst [smem:[#allocation16_spill]] %s1777_s12  ;;  %s330_s19 = sand.u32 1, %s1797_s17  }
  0x19   : > { %2402 = sst [smem:[#allocation17_spill]] %s1781_s13  ;;  %p118_p3 = por %p116_p1, %p63_p0 }
  0x1a   : > { %2403 = sst [smem:[#allocation18_spill]] %s1793_s16  ;;  %s332_s20 = sand.u32 1, %s1757_s29  }
  0x1b   : > { %s1330_s21 = sshll.u32 %s1785_s14, 7  ;;  %s1928_s22 = sshll.u32 %s332_s20, 8 }
  0x1c   : > { %s2404_s2 = sld [smem:[#allocation27_spill]]  ;;  %p1937_p4 = pnand %p2370_p2, %p118_p3 }
  0x1d   : > { %s334_s18 = scalar_lea.vmem [#allocation6], %s1928_s22  ;;  %s1944_s8 = scalar_lea.sflag [#allocation7], %s330_s19 }
  0x1e   : > { %s341_s20 = sshll.u32 %s334_s18, 4  ;;  %p2376_p6 = pneg %p1937_p4  ;;  %s1942_s20 = int_to_ptr.vmem [resolvable:$true] %s341_s20 }
  0x22   : > { %s1933_s25 = scalar_lea.hbm %s2404_s2, %s1330_s21  ;;  %s1570_s7 = scalar_lea.hbm %s2404_s2, 8192 }
  0x23   : > { %s1565_s23 = scalar_lea.hbm %s1933_s25, 4096  ;;  %p1571_p9 = scmp.lt.u32.totalorder %s1933_s25, %s2404_s2 }
  0x24   : > { %p1566_p5 = scmp.ne.s32.totalorder %s1933_s25, %s1565_s23  ;;  %p1572_p10 = scmp.lt.u32.totalorder %s1570_s7, %s1565_s23 }
  0x25   : > { %p1574_p12 = scmp.lt.u32.totalorder %s1565_s23, %s1933_s25 }
  0x26   : > { %p1568_p7 = pnand %p2376_p6, %p1566_p5  ;;  %p1573_p11 = por %p1572_p10, %p1571_p9 }
  0x28   : > { %p1569_p8 = pneg %p1568_p7  ;;  %p1575_p13 = por %p1574_p12, %p1573_p11 }
  0x2a   : > { %p1576_p1 = pnand %p1575_p13, %p1569_p8 }
  0x2c   : > { %1579 = shalt.err (!%p1576_p1)
}
  0x2d   : > { %s1580_s18 = scalar_lea.vmem %s1942_s20, 4096  ;;  %s1799_s19 = smov [#allocation6]  }
  0x2e   : > { %p1581_p3 = scmp.ne.s32.totalorder %s1942_s20, %s1580_s18  ;;  %s1585_s21 = sshll.u32 %s1799_s19, 4  ;;  %s1586_s21 = int_to_ptr.vmem [resolvable:$false] %s1585_s21 }
  0x2f   : > { %s1587_s5 = scalar_lea.vmem %s1586_s21, 8192  ;;  %p1588_p2 = scmp.lt.s32.totalorder %s1942_s20, %s1586_s21 }
  0x30   : > { %p1583_p5 = pnand %p1581_p3, %p2376_p6  ;;  %p1589_p9 = scmp.lt.s32.totalorder %s1587_s5, %s1580_s18 }
  0x32   : > { %p1584_p7 = pneg %p1583_p5  ;;  %p1590_p10 = por %p1589_p9, %p1588_p2 }
  0x34   : > { %p1591_p11 = pnand %p1590_p10, %p1584_p7 }
  0x36   : > { %1594 = shalt.err (!%p1591_p11)
}
  0x37   : > { %s1800_s6 = smov 256   ;;  %s2371_s7 = smov 128  }
  0x38   : > { %s2372_s23 = smov 8   ;;  %p1250_p2 = scmp.ge.s32.totalorder %s1797_s17, 1 }
  0x39   : > { %1347 = dma.hbm_to_vmem [thread:$0]  (!%p1937_p4), %s1933_s25, 4096, %s1942_s20, %s1944_s8, %s1800_s6, %s2371_s7, %s2372_s23  }
  0x3a   : > { %p379_p8 = scmp.lt.s32.totalorder %s1797_s17, 9  ;;  %s1981_s18 = sadd.s32 4294967295, %s1797_s17  }
  0x3b   : > { %s1236_s19 = sadd.s32 4294967294, %s1797_s17   ;;  %s39_s21 = sadd.s32 1, %s1785_s14 }
  0x3c   : > { %p1976_p12 = pnand %p1250_p2, %p379_p8  ;;  %p40_p13 = scmp.ge.s32.totalorder %s39_s21, 2 }
  0x3d   : > { %s42_s25 = sadd.s32 1, %s1789_s15  ;;  %s46_s20 = sadd.s32 1, %s1793_s16 }
  0x3e   : > { %s2406_s24 = scalar_select %p1976_p12, 1, 0 }
  0x3f   : > { %s55_s5 = sadd.s32 1, %s1769_s10  ;;  %s2463_s21 = smov (%p40_p13, %s39_s21), 0 }
  0x40   : > { %2407 = sst [smem:[#allocation19_spill]] %s2463_s21  ;;  %s2465_s25 = smov (!%p40_p13, %s42_s25), %s1789_s15 }
  0x41   : > { %p62_p1 = scmp.ne.s32.totalorder %s1769_s10, %s1765_s9  ;;  %p68_p3 = scmp.ne.s32.totalorder %s1765_s9, %s1761_s30 }
  0x42   : > { %p44_p5 = scmp.ge.s32.totalorder %s2465_s25, 2  ;;  %p69_p7 = scmp.eq.s32.totalorder %s1981_s18, 0 }
  0x43   : > { %p2001_p9 = por %p63_p0, %p62_p1  ;;  %s106_s7 = ssub.s32 %s1785_s14, %s2463_s21 }
  0x44   : > { %s2467_s25 = smov (%p44_p5, %s2465_s25), 0  ;;  %s2469_s20 = smov (!%p44_p5, %s46_s20), %s1793_s16 }
  0x45   : > { %2409 = sst [smem:[#allocation20_spill]] %s2467_s25  ;;  %s51_s23 = ssub.s32 %s1789_s15, %s2467_s25 }
  0x46   : > { %p2017_p10 = por %p69_p7, %p68_p3  ;;  %p48_p0 = scmp.ge.s32.totalorder %s2469_s20, 2 }
  0x47   : > { %p107_p11 = scmp.eq.s32.totalorder %s106_s7, 0  ;;  %p122_p2 = scmp.ne.s32.totalorder %s1753_s28, %s1749_s27 }
  0x48   : > { %s2410_s2 = scalar_select %p2017_p10, 1, 0 }
  0x49   : > { %p263_p8 = scmp.eq.s32.totalorder %s1981_s18, 7  ;;  %s2471_s20 = smov (%p48_p0, %s2469_s20), 0 }
  0x4a   : > { %2411 = sst [smem:[#allocation21_spill]] %s2471_s20  ;;  %s2412_s21 = sadd.s32 1, %s1757_s29 }
  0x4b   : > { %s2029_s3 = scalar_select %p107_p11, %s1757_s29, %s2412_s21  }
  0x4c   : > { %s50_s25 = ssub.s32 %s1793_s16, %s2471_s20  ;;  %p2035_p13 = por %p122_p2, %p69_p7 }
  0x4d   : > { %2413 = sst [smem:[#allocation22_spill]] %s2029_s3  ;;  %s52_s11 = sor.u32 %s51_s23, %s50_s25 }
  0x4e   : > { %s2414_s1 = scalar_select %p2035_p13, 1, 0 }
  0x4f   : > { %p2042_p5 = por %p263_p8, %p62_p1  ;;  %p53_p0 = scmp.eq.s32.totalorder %s52_s11, 0 }
  0x50   : > { %2415 = sst [smem:[#allocation23_spill]] %s2414_s1  ;;  %p269_p6 = scmp.eq.s32.totalorder %s1236_s19, 7 }
  0x51   : > { %s2416_s7 = scalar_select %p2042_p5, 1, 0 }
  0x52   : > { %s298_s27 = sand.u32 1, %s1769_s10   ;;  %s1240_s21 = sshll.u32 %s1789_s15, 1 }
  0x53   : > { %2417 = sst [smem:[#allocation24_spill]] %s2416_s7  ;;  %p2054_p7 = por %p269_p6, %p68_p3 }
  0x54   : > { %s2049_s20 = scalar_select %p53_p0, %s1769_s10, %s55_s5  }
  0x55   : > { %s2418_s3 = scalar_select %p2054_p7, 1, 0 }
  0x56   : > { %s1239_s23 = sshll.u32 %s298_s27, 4  ;;  %s1241_s25 = sshll.u32 %s1793_s16, 2 }
  0x57   : > { %s308_s29 = sadd.s32 %s1241_s25, %s1240_s21  ;;  %s302_s13 = scalar_lea.vmem [#allocation3], %s1239_s23 }
  0x58   : > { %s1242_s12 = sshll.u32 %s308_s29, 7  ;;  %s312_s1 = sshll.u32 %s302_s13, 4  ;;  %s2064_s1 = int_to_ptr.vmem [resolvable:$true] %s312_s1 }
  0x59   : > { %s2419_s0 = sld [smem:[#allocation25_spill]]  ;;  %p2420_p6 = scmp.lt.s32.totalorder %s1797_s17, 8 }
  0x5a   : > { %s1332_s29 = sshll.u32 %s1785_s14, 12  ;;  %s363_s13 = scalar_lea.vmem [#allocation8], %s1928_s22 }
  0x5b   : > { %p2070_p1 = pnand %p2420_p6, %p2001_p9  ;;  %s2076_s5 = sshll.u32 %s363_s13, 4  ;;  %s2109_s5 = int_to_ptr.vmem [resolvable:$true] %s2076_s5 }
  0x5c   : > { %s2081_s7 = scalar_lea.hbm %s2364_s4, %s1332_s29  ;;  %s299_s21 = scalar_lea.sflag [#allocation4], %s298_s27 }
  0x5d   : > { %p1597_p11 = pneg %p2070_p1 }
  0x5f   : > { %s2062_s11 = scalar_lea.hbm %s2419_s0, %s1242_s12  ;;  %s1600_s22 = scalar_lea.hbm %s2419_s0, 1024 }
  0x60   : > { %s1595_s23 = scalar_lea.hbm %s2062_s11, 256  ;;  %p1601_p8 = scmp.lt.u32.totalorder %s2062_s11, %s2419_s0 }
  0x61   : > { %p1596_p3 = scmp.ne.s32.totalorder %s2062_s11, %s1595_s23  ;;  %p1602_p0 = scmp.lt.u32.totalorder %s1600_s22, %s1595_s23 }
  0x62   : > { %p1604_p7 = scmp.lt.u32.totalorder %s1595_s23, %s2062_s11 }
  0x63   : > { %p1598_p9 = pnand %p1597_p11, %p1596_p3  ;;  %p1603_p6 = por %p1602_p0, %p1601_p8 }
  0x65   : > { %p1599_p2 = pneg %p1598_p9  ;;  %p1605_p5 = por %p1604_p7, %p1603_p6 }
  0x67   : > { %p1606_p13 = pnand %p1605_p5, %p1599_p2 }
  0x69   : > { %1609 = shalt.err (!%p1606_p13)
}
  0x6a   : > { %s1610_s27 = scalar_lea.vmem %s2064_s1, 256  ;;  %s1803_s29 = smov [#allocation3]  }
  0x6b   : > { %p1611_p3 = scmp.ne.s32.totalorder %s2064_s1, %s1610_s27  ;;  %s1615_s28 = sshll.u32 %s1803_s29, 4  ;;  %s1616_s28 = int_to_ptr.vmem [resolvable:$false] %s1615_s28 }
  0x6c   : > { %s1617_s16 = scalar_lea.vmem %s1616_s28, 512  ;;  %p1618_p12 = scmp.lt.s32.totalorder %s2064_s1, %s1616_s28 }
  0x6d   : > { %p1613_p9 = pnand %p1611_p3, %p1597_p11  ;;  %p1619_p8 = scmp.lt.s32.totalorder %s1617_s16, %s1610_s27 }
  0x6f   : > { %p1614_p10 = pneg %p1613_p9  ;;  %p1620_p0 = por %p1619_p8, %p1618_p12 }
  0x71   : > { %p1621_p7 = pnand %p1620_p0, %p1614_p10 }
  0x73   : > { %1624 = shalt.err (!%p1621_p7)
}
  0x74   : > { %1344 = dma.hbm_to_vmem [thread:$0]  (!%p2070_p1), %s2062_s11, 256, %s2064_s1, %s299_s21  }
  0x75   : > { %s1625_s12 = scalar_lea.hbm %s2081_s7, 4096  ;;  %p2422_p5 = pneg %p1937_p4 }
  0x76   : > { %p1626_p13 = scmp.ne.s32.totalorder %s2081_s7, %s1625_s12  ;;  %s1630_s19 = scalar_lea.hbm %s2364_s4, 8192 }
  0x77   : > { %p1631_p11 = scmp.lt.u32.totalorder %s2081_s7, %s2364_s4  ;;  %p1632_p2 = scmp.lt.u32.totalorder %s1630_s19, %s1625_s12 }
  0x78   : > { %p1628_p12 = pnand %p1626_p13, %p2422_p5  ;;  %p1634_p3 = scmp.lt.u32.totalorder %s1625_s12, %s2081_s7 }
  0x79   : > { %p1633_p6 = por %p1632_p2, %p1631_p11 }
  0x7a   : > { %p1629_p10 = pneg %p1628_p12 }
  0x7b   : > { %p1635_p1 = por %p1634_p3, %p1633_p6 }
  0x7d   : > { %p1636_p9 = pnand %p1635_p1, %p1629_p10 }
  0x7f   : > { %1639 = shalt.err (!%p1636_p9)
}
  0x80   : > { %s1640_s1 = scalar_lea.vmem %s2109_s5, 4096  ;;  %p2423_p0 = pmov %p2422_p5 }
  0x81   : > { %p1641_p8 = scmp.ne.s32.totalorder %s2109_s5, %s1640_s1  ;;  %s1804_s11 = smov [#allocation8]  }
  0x82   : > { %s1645_s21 = sshll.u32 %s1804_s11, 4  ;;  %s1646_s21 = int_to_ptr.vmem [resolvable:$false] %s1645_s21 }
  0x83   : > { %p1643_p7 = pnand %p1641_p8, %p2423_p0  ;;  %s1647_s13 = scalar_lea.vmem %s1646_s21, 8192 }
  0x84   : > { %p1648_p5 = scmp.lt.s32.totalorder %s2109_s5, %s1646_s21  ;;  %p1649_p12 = scmp.lt.s32.totalorder %s1647_s13, %s1640_s1 }
  0x85   : > { %p1644_p13 = pneg %p1643_p7 }
  0x86   : > { %p1650_p11 = por %p1649_p12, %p1648_p5 }
  0x88   : > { %p1651_p2 = pnand %p1650_p11, %p1644_p13 }
  0x8a   : > { %1654 = shalt.err (!%p1651_p2)
}
  0x8b   : > { %s2424_s27 = smov 8   ;;  %s2425_s29 = smov 128  }
  0x8c   : > { %1350 = dma.hbm_to_vmem [thread:$0]  (!%p1937_p4), %s2081_s7, 4096, %s2109_s5, %s1944_s8, %s2425_s29, %s2425_s29, %s2424_s27  }
  0x8d   : > { %p2426_p10 = scmp.ne.s32.totalorder %s2406_s24, 0 }
  0x8e   : > { %s2141_s28 = sand.u32 (!%p2426_p10), 1, %s1765_s9   ;;  %p2427_p6 = scmp.ne.s32.totalorder (!%p2426_p10), %s2410_s2, 0 }
  0x8f   : > { %383 = sbr.rel (%p2426_p10) target bundleno = 892 (0x37c), region = 52  ;;  %s1251_s16 = sshll.u32 (!%p2426_p10), %s2141_s28, 4 }
  0x90   : > { %s386_s12 = scalar_lea.sflag (!%p2426_p10), [#allocation4], %s2141_s28  ;;  %s2145_s23 = scalar_lea.vmem (!%p2426_p10), [#allocation3], %s1251_s16 }
  0x96   : > { %1736 = dma.done.wait (%p2427_p6), %s386_s12, 256  }
  0x97   : > { %1738 = vsyncadd (%p2427_p6), %s386_s12, 4294967040  ;;  %s2428_s8 = sld [smem:[#allocation13_spill]]  ;;  %s2429_s26 = sld [smem:[#allocation23_spill]] }
  0x98   : > { %s394_s24 = sand.u32 1, %s1981_s18  }
  0x99   : > { %s395_s6 = scalar_lea.sflag [#allocation7], %s394_s24 }
  0x9d   : > { %s396_s5 = sand.u32 1, %s2428_s8   ;;  %p2430_p4 = scmp.ne.s32.totalorder %s2429_s26, 0 }
  0x9e   : > { %s1252_s7 = sshll.u32 %s396_s5, 8 }
  0x9f   : > { %s2153_s19 = scalar_lea.vmem [#allocation6], %s1252_s7 }
  0xa0   : > { %1740 = dma.done.wait (%p2430_p4), %s395_s6, 8192  }
  0xa1   : > { %1742 = vsyncadd (%p2430_p4), %s395_s6, 4294959104  ;;  %s2431_s25 = sld [smem:[#allocation17_spill]]  ;;  %s2432_s22 = sld [smem:[#allocation16_spill]] }
  0xa2   : > { %s2433_s1 = sld [smem:[#allocation15_spill]]  ;;  %s2434_s29 = sld [smem:[#allocation26_spill]] }
  0xa3   : > { %s2435_s24 = sld [smem:[#allocation28_spill]]  ;;  %s2175_s6 = scalar_lea.vmem [#allocation8], %s1252_s7 }
  0xa4   : > { %s2177_s0 = scalar_lea.vmem [#allocation9], %s1251_s16 }
  0xa7   : > { %p462_p3 = scmp.lt.s32.totalorder %s2431_s25, 1  ;;  %p464_p1 = scmp.lt.s32.totalorder %s2432_s22, 1 }
  0xa8   : > { %s1257_s2 = sshll.u32 %s2433_s1, 1  ;;  %p1258_p8 = scmp.ne.s32.totalorder %s2433_s1, 0 }
  0xa9   : > { %s2473_s25 = smov (!%p462_p3, %s2431_s25), 1  ;;  %s2475_s22 = smov (!%p464_p1, %s2432_s22), 1 }
  0xaa   : > { %s1255_s18 = sshll.u32 %s2473_s25, 1  ;;  %p472_p9 = scmp.lt.s32.totalorder %s1257_s2, 3  ;;  %v1805_v0 = vmov (!%p1258_p8), 0.0  }
  0xab   : > { %s467_s11 = sadd.s32 %s1255_s18, %s2475_s22  ;;  %480 = sbr.rel (%p1258_p8) target bundleno = 178 (0xb2), region = 68  ;;  %481 = vst [vmem:[#allocation2] sm:$0xff] (!%p1258_p8), %v1805_v0  ;;  %482 = vst [vmem:[#allocation2 + $0x8] sm:$0xff] (!%p1258_p8), %v1805_v0 }
  0xac   : > { %s1256_s21 = sshll.u32 %s467_s11, 3  ;;  %s2477_s2 = smov (!%p472_p9, %s1257_s2), 3 }
  0xad   : > { %s2167_s12 = scalar_lea.vmem %s2434_s29, %s1256_s21  ;;  %s474_s5 = scalar_lea.vmem %s2435_s24, %s2477_s2 }
  0xb2 PF: > { %v1466_v1 = vld [vmem:[%s2153_s19 + $0x4] ss:$8 sps:$4 sm:$0xff]   ;;  %v1468_v2 = vld [vmem:[%s2153_s19] ss:$8 sps:$4 sm:$0xff]   ;;  %v1469_v3 = vld [vmem:[%s2153_s19 + $0x14] ss:$8 sps:$4 sm:$0xff]  }
  0xb3   : > { %691 = vmatprep.subr.bf16.mxu0 %v1466_v1  ;;  %v1471_v4 = vld [vmem:[%s2153_s19 + $0x10] ss:$8 sps:$4 sm:$0xff]   ;;  %v1472_v5 = vld [vmem:[%s2153_s19 + $0x24] ss:$8 sps:$4 sm:$0xff]   ;;  %v1474_v6 = vld [vmem:[%s2153_s19 + $0x20] ss:$8 sps:$4 sm:$0xff]  }
  0xb4   : > { %692 = vmatpush1.bf16.msra.mxu0 %v1468_v2  ;;  %v1475_v7 = vld [vmem:[%s2153_s19 + $0x34] ss:$8 sps:$4 sm:$0xff]   ;;  %v1477_v8 = vld [vmem:[%s2153_s19 + $0x30] ss:$8 sps:$4 sm:$0xff]   ;;  %v1478_v9 = vld [vmem:[%s2153_s19 + $0x44] ss:$8 sps:$4 sm:$0xff]  }
  0xb5   : > { %693 = vmatprep.subr.bf16.mxu0 %v1469_v3  ;;  %v1480_v10 = vld [vmem:[%s2153_s19 + $0x40] ss:$8 sps:$4 sm:$0xff]   ;;  %v1481_v11 = vld [vmem:[%s2153_s19 + $0x54] ss:$8 sps:$4 sm:$0xff]   ;;  %v1483_v12 = vld [vmem:[%s2153_s19 + $0x50] ss:$8 sps:$4 sm:$0xff]  }
  0xb6   : > { %v1484_v13 = vld [vmem:[%s2153_s19 + $0x64] ss:$8 sps:$4 sm:$0xff]   ;;  %v1486_v14 = vld [vmem:[%s2153_s19 + $0x60] ss:$8 sps:$4 sm:$0xff]   ;;  %v1487_v19 = vld [vmem:[%s2153_s19 + $0x74] ss:$8 sps:$4 sm:$0xff]  }
  0xb7   : > { %v2195_v15 = vld [vmem:[%s2145_s23 + $0x8] sm:$0xff]  ;;  %v2238_v55 = vld [vmem:[%s2145_s23] sm:$0xff] }
  0xb8   : > { %694 = vmatpush1.bf16.msra.mxu0 %v1471_v4  ;;  %v486_v16 = vpack.c.bf16 %v2195_v15, %v2195_v15  ;;  %v1514_v17 = vld [vmem:[%s2175_s6 + $0x4] ss:$8 sps:$4 sm:$0xff]   ;;  %v1516_v18 = vld [vmem:[%s2175_s6] ss:$8 sps:$4 sm:$0xff]   ;;  %v1517_v20 = vld [vmem:[%s2175_s6 + $0x14] ss:$8 sps:$4 sm:$0xff]   ;;  %v485_v57 = vpack.c.bf16 %v2238_v55, %v2238_v55 }
  0xb9   : > { %695 = vmatprep.subr.bf16.mxu0 %v1472_v5  ;;  %v1489_v21 = vld [vmem:[%s2153_s19 + $0x70] ss:$8 sps:$4 sm:$0xff]   ;;  %930 = vmatprep.subr.bf16.mxu1 %v1514_v17  ;;  %v1520_v23 = vld [vmem:[%s2175_s6 + $0x24] ss:$8 sps:$4 sm:$0xff]   ;;  %v1492_v25 = vld [vmem:[%s2153_s19 + $0x80] ss:$8 sps:$4 sm:$0xff]   ;;  %v521_v5 = vlaneseq }
  0xba   : > { %723 = vmatprep.mubr.bf16.mxu0 %v486_v16  ;;  %931 = vmatpush1.bf16.msra.mxu1 %v1516_v18  ;;  %v1519_v22 = vld [vmem:[%s2175_s6 + $0x10] ss:$8 sps:$4 sm:$0xff]   ;;  %v1490_v24 = vld [vmem:[%s2153_s19 + $0x84] ss:$8 sps:$4 sm:$0xff]   ;;  %v1522_v26 = vld [vmem:[%s2175_s6 + $0x20] ss:$8 sps:$4 sm:$0xff]  }
  0xbb   : > { %932 = vmatprep.subr.bf16.mxu1 %v1517_v20  ;;  %v1523_v27 = vld [vmem:[%s2175_s6 + $0x34] ss:$8 sps:$4 sm:$0xff]   ;;  %v1495_v29 = vld [vmem:[%s2153_s19 + $0x90] ss:$8 sps:$4 sm:$0xff]   ;;  %v1526_v31 = vld [vmem:[%s2175_s6 + $0x44] ss:$8 sps:$4 sm:$0xff]  }
  0xbc   : > { %696 = vmatpush1.bf16.msra.mxu0 %v1474_v6  ;;  %v1493_v28 = vld [vmem:[%s2153_s19 + $0x94] ss:$8 sps:$4 sm:$0xff]   ;;  %v1525_v30 = vld [vmem:[%s2175_s6 + $0x30] ss:$8 sps:$4 sm:$0xff]   ;;  %v1496_v32 = vld [vmem:[%s2153_s19 + $0xa4] ss:$8 sps:$4 sm:$0xff]  }
  0xbd   : > { %697 = vmatprep.subr.bf16.mxu0 %v1475_v7  ;;  %v1498_v33 = vld [vmem:[%s2153_s19 + $0xa0] ss:$8 sps:$4 sm:$0xff]   ;;  %v1529_v35 = vld [vmem:[%s2175_s6 + $0x54] ss:$8 sps:$4 sm:$0xff]   ;;  %v1531_v37 = vld [vmem:[%s2175_s6 + $0x50] ss:$8 sps:$4 sm:$0xff]  }
  0xbe   : > { %933 = vmatpush1.bf16.msra.mxu1 %v1519_v22  ;;  %v1528_v34 = vld [vmem:[%s2175_s6 + $0x40] ss:$8 sps:$4 sm:$0xff]   ;;  %v1499_v36 = vld [vmem:[%s2153_s19 + $0xb4] ss:$8 sps:$4 sm:$0xff]   ;;  %v1501_v38 = vld [vmem:[%s2153_s19 + $0xb0] ss:$8 sps:$4 sm:$0xff]  }
  0xbf   : > { %934 = vmatprep.subr.bf16.mxu1 %v1520_v23  ;;  %v1532_v39 = vld [vmem:[%s2175_s6 + $0x64] ss:$8 sps:$4 sm:$0xff]   ;;  %v1534_v41 = vld [vmem:[%s2175_s6 + $0x60] ss:$8 sps:$4 sm:$0xff]   ;;  %v1535_v43 = vld [vmem:[%s2175_s6 + $0x74] ss:$8 sps:$4 sm:$0xff]  }
  0xc0   : > { %698 = vmatpush1.bf16.msra.mxu0 %v1477_v8  ;;  %v1502_v40 = vld [vmem:[%s2153_s19 + $0xc4] ss:$8 sps:$4 sm:$0xff]   ;;  %v1504_v42 = vld [vmem:[%s2153_s19 + $0xc0] ss:$8 sps:$4 sm:$0xff]   ;;  %v1505_v44 = vld [vmem:[%s2153_s19 + $0xd4] ss:$8 sps:$4 sm:$0xff]  }
  0xc1   : > { %699 = vmatprep.subr.bf16.mxu0 %v1478_v9  ;;  %v1537_v45 = vld [vmem:[%s2175_s6 + $0x70] ss:$8 sps:$4 sm:$0xff]   ;;  %v1538_v47 = vld [vmem:[%s2175_s6 + $0x84] ss:$8 sps:$4 sm:$0xff]   ;;  %v1540_v49 = vld [vmem:[%s2175_s6 + $0x80] ss:$8 sps:$4 sm:$0xff]  }
  0xc2   : > { %935 = vmatpush1.bf16.msra.mxu1 %v1522_v26  ;;  %v1507_v46 = vld [vmem:[%s2153_s19 + $0xd0] ss:$8 sps:$4 sm:$0xff]   ;;  %v1508_v48 = vld [vmem:[%s2153_s19 + $0xe4] ss:$8 sps:$4 sm:$0xff]   ;;  %v1510_v50 = vld [vmem:[%s2153_s19 + $0xe0] ss:$8 sps:$4 sm:$0xff]  }
  0xc3   : > { %936 = vmatprep.subr.bf16.mxu1 %v1523_v27  ;;  %v1541_v51 = vld [vmem:[%s2175_s6 + $0x94] ss:$8 sps:$4 sm:$0xff]   ;;  %v1543_v53 = vld [vmem:[%s2175_s6 + $0x90] ss:$8 sps:$4 sm:$0xff]   ;;  %v1544_v56 = vld [vmem:[%s2175_s6 + $0xa4] ss:$8 sps:$4 sm:$0xff]  }
  0xc4   : > { %700 = vmatpush1.bf16.msra.mxu0 %v1480_v10  ;;  %v1511_v52 = vld [vmem:[%s2153_s19 + $0xf4] ss:$8 sps:$4 sm:$0xff]   ;;  %v1513_v54 = vld [vmem:[%s2153_s19 + $0xf0] ss:$8 sps:$4 sm:$0xff]   ;;  %v1546_v58 = vld [vmem:[%s2175_s6 + $0xa0] ss:$8 sps:$4 sm:$0xff]  }
  0xc5   : > { %701 = vmatprep.subr.bf16.mxu0 %v1481_v11  ;;  %v1547_v59 = vld [vmem:[%s2175_s6 + $0xb4] ss:$8 sps:$4 sm:$0xff]   ;;  %v1549_v60 = vld [vmem:[%s2175_s6 + $0xb0] ss:$8 sps:$4 sm:$0xff]   ;;  %v1550_v61 = vld [vmem:[%s2175_s6 + $0xc4] ss:$8 sps:$4 sm:$0xff]  }
  0xc6   : > { %937 = vmatpush1.bf16.msra.mxu1 %v1525_v30  ;;  %v1552_v62 = vld [vmem:[%s2175_s6 + $0xc0] ss:$8 sps:$4 sm:$0xff]   ;;  %v1553_v63 = vld [vmem:[%s2175_s6 + $0xd4] ss:$8 sps:$4 sm:$0xff]   ;;  %v1555_v0 = vld [vmem:[%s2175_s6 + $0xd0] ss:$8 sps:$4 sm:$0xff]  }
  0xc7   : > { %938 = vmatprep.subr.bf16.mxu1 %v1526_v31  ;;  %v1556_v1 = vld [vmem:[%s2175_s6 + $0xe4] ss:$8 sps:$4 sm:$0xff]   ;;  %v1558_v2 = vld [vmem:[%s2175_s6 + $0xe0] ss:$8 sps:$4 sm:$0xff]   ;;  %v1559_v3 = vld [vmem:[%s2175_s6 + $0xf4] ss:$8 sps:$4 sm:$0xff]  }
  0xc8   : > { %702 = vmatpush1.bf16.msra.mxu0 %v1483_v12  ;;  %v1561_v4 = vld [vmem:[%s2175_s6 + $0xf0] ss:$8 sps:$4 sm:$0xff]   ;;  %v522_v6 = vshrl.u32 %v521_v5, 7  ;;  %s2437_s19 = sld [smem:[#allocation15_spill]] }
  0xc9   : > { %703 = vmatprep.subr.bf16.mxu0 %v1484_v13  ;;  %v519_v8 = vld [vmem:[%s474_s5] sm:$0x3] }
  0xca   : > { %939 = vmatpush1.bf16.msra.mxu1 %v1528_v34  ;;  %v2254_v7 = vsub.s32 0, %v522_v6  ;;  %v2261_v9 = vsub.s32 1, %v522_v6  ;;  %v734_v23 = vld [vmem:[#allocation2] sm:$0xff] }
  0xcb   : > { %940 = vmatprep.subr.bf16.mxu1 %v1529_v35 }
  0xcc   : > { %704 = vmatpush1.bf16.msra.mxu0 %v1486_v14  ;;  %v524_v10 = vrot.slane %v519_v8, %v2254_v7  ;;  %v528_v11 = vrot.slane %v519_v8, %v2261_v9 }
  0xcd   : > { %705 = vmatprep.subr.bf16.mxu0 %v1487_v19 }
  0xce   : > { %941 = vmatpush1.bf16.msra.mxu1 %v1531_v37  ;;  %p1323_p0 = scmp.ne.s32.totalorder %s2437_s19, 1 }
  0xcf   : > { %942 = vmatprep.subr.bf16.mxu1 %v1532_v39  ;;  %v995_v31 = vld [vmem:[%s2167_s12] sm:$0xff] (!%p1323_p0)  ;;  %s2438_s1 = sld [smem:[#allocation29_spill]] (!%p1323_p0)  ;;  %s2439_s11 = sld [smem:[#allocation30_spill]] (!%p1323_p0) }
  0xd0   : > { %706 = vmatpush1.bf16.msra.mxu0 %v1489_v21  ;;  %s2440_s27 = sld [smem:[#allocation31_spill]] (!%p1323_p0) }
  0xd1   : > { %707 = vmatprep.subr.bf16.mxu0 %v1490_v24  ;;  %v735_v24 = vld [vmem:[#allocation2 + $0x8] sm:$0xff] }
  0xd2   : > { %943 = vmatpush1.bf16.msra.mxu1 %v1534_v41 }
  0xd3   : > { %944 = vmatprep.subr.bf16.mxu1 %v1535_v43 }
  0xd4   : > { %708 = vmatpush1.bf16.msra.mxu0 %v1492_v25 }
  0xd5   : > { %709 = vmatprep.subr.bf16.mxu0 %v1493_v28 }
  0xd6   : > { %945 = vmatpush1.bf16.msra.mxu1 %v1537_v45 }
  0xd7   : > { %946 = vmatprep.subr.bf16.mxu1 %v1538_v47 }
  0xd8   : > { %710 = vmatpush1.bf16.msra.mxu0 %v1495_v29 }
  0xd9   : > { %711 = vmatprep.subr.bf16.mxu0 %v1496_v32  ;;  %v1806_v32 = vmov (!%p1323_p0), 0  }
  0xda   : > { %947 = vmatpush1.bf16.msra.mxu1 %v1540_v49  ;;  %1562 = vset.pattern.permute.xlu0 (!%p1323_p0), %v1806_v32 }
  0xdb   : > { %948 = vmatprep.subr.bf16.mxu1 %v1541_v51  ;;  %998 = vperm.xlu0 (!%p1323_p0), %1562, %v995_v31  }
  0xdc   : > { %712 = vmatpush1.bf16.msra.mxu0 %v1498_v33  ;;  %v981_v33 = vld [vmem:[%s2438_s1] sm:$0x3] (!%p1323_p0) }
  0xdd   : > { %713 = vmatprep.subr.bf16.mxu0 %v1499_v36  ;;  %v986_v34 = vrot.slane (!%p1323_p0), %v981_v33, %v2254_v7  ;;  %v990_v35 = vrot.slane (!%p1323_p0), %v981_v33, %v2261_v9 }
  0xde   : > { %949 = vmatpush1.bf16.msra.mxu1 %v1543_v53 }
  0xdf   : > { %950 = vmatprep.subr.bf16.mxu1 %v1544_v56 }
  0xe0   : > { %714 = vmatpush1.bf16.msra.mxu0 %v1501_v38 }
  0xe1   : > { %715 = vmatprep.subr.bf16.mxu0 %v1502_v40 }
  0xe2   : > { %951 = vmatpush1.bf16.msra.mxu1 %v1546_v58 }
  0xe3   : > { %952 = vmatprep.subr.bf16.mxu1 %v1547_v59 }
  0xe4   : > { %716 = vmatpush1.bf16.msra.mxu0 %v1504_v42 }
  0xe5   : > { %717 = vmatprep.subr.bf16.mxu0 %v1505_v44 }
  0xe6   : > { %953 = vmatpush1.bf16.msra.mxu1 %v1549_v60 }
  0xe7   : > { %954 = vmatprep.subr.bf16.mxu1 %v1550_v61 }
  0xe8   : > { %718 = vmatpush1.bf16.msra.mxu0 %v1507_v46 }
  0xe9   : > { %719 = vmatprep.subr.bf16.mxu0 %v1508_v48 }
  0xea   : > { %955 = vmatpush1.bf16.msra.mxu1 %v1552_v62 }
  0xeb   : > { %956 = vmatprep.subr.bf16.mxu1 %v1553_v63 }
  0xec   : > { %720 = vmatpush1.bf16.msra.mxu0 %v1510_v50 }
  0xed   : > { %721 = vmatprep.subr.bf16.mxu0 %v1511_v52 }
  0xee   : > { %957 = vmatpush1.bf16.msra.mxu1 %v1555_v0 }
  0xef   : > { %958 = vmatprep.subr.bf16.mxu1 %v1556_v1 }
  0xf0   : > { %722 = vmatpush1.bf16.msra.mxu0 %v1513_v54 }
  0xf2   : > { %959 = vmatpush1.bf16.msra.mxu1 %v1558_v2 }
  0xf3   : > { %724 = vmatmul.mubr.bf16.vlgmr.msra.gmra.mrb[0].mxu0 %v485_v57  ;;  %960 = vmatprep.subr.bf16.mxu1 %v1559_v3 }
  0xf6   : > { %961 = vmatpush1.bf16.msra.mxu1 %v1561_v4 }
 0x15a   : > { %v999_v40 = vpop.permute.xlu0 (!%p1323_p0), %998 }
 0x1c6   : > { %v725_v12 = vpop.f32.mrb[0].mxu0 }
 0x1c7   : > { %v726_v13 = vadd.f32 %v725_v12, %v524_v10  ;;  %v727_v14 = vpop.f32.mrb[1].mxu0 }
 0x1c8   : > { %v728_v16 = vadd.f32 %v727_v14, %v528_v11  ;;  %v729_v17 = vpop.f32.mrb[2].mxu0 }
 0x1c9   : > { %v732_v18 = vmax.f32 %v726_v13, 0.0  ;;  %v730_v19 = vpop.f32.mrb[3].mxu0 }
 0x1ca   : > { %v733_v20 = vmax.f32 %v728_v16, 0.0 }
 0x1cb   : > { %v736_v22 = vpack.c.bf16 %v732_v18, %v732_v18 }
 0x1cc   : > { %v737_v21 = vpack.c.bf16 %v733_v20, %v733_v20 }
 0x1ce   : > { %962 = vmatprep.mubr.bf16.mxu1 %v737_v21 }
 0x1cf   : > { %963 = vmatmul.mubr.bf16.vlgmr.msra.gmra.mrb[0].mxu1 %v736_v22 }
 0x2a0   : > { %978 = sbr.rel (%p1323_p0) target bundleno = 864 (0x360), region = 72 }
 0x2a2   : > { %v964_v25 = vpop.f32.mrb[0].mxu1 }
 0x2a3   : > { %v971_v26 = vadd.f32 %v964_v25, %v734_v23  ;;  %v966_v27 = vpop.f32.mrb[1].mxu1 }
 0x2a4   : > { %v972_v28 = vadd.f32 %v966_v27, %v735_v24  ;;  %v968_v29 = vpop.f32.mrb[2].mxu1 }
 0x2a5   : > { %973 = vst [vmem:[#allocation2] sm:$0xff] %v971_v26  ;;  %v969_v30 = vpop.f32.mrb[3].mxu1 }
 0x2a6   : > { %974 = vst [vmem:[#allocation2 + $0x8] sm:$0xff] %v972_v28 }
 0x2ac   : > { %v979_v36 = vld [vmem:[#allocation2] sm:$0xff] }
 0x2ad   : > { %v980_v37 = vld [vmem:[#allocation2 + $0x8] sm:$0xff]  ;;  %v993_v38 = vadd.f32 %v986_v34, %v979_v36 }
 0x2ae   : > { %v994_v39 = vadd.f32 %v990_v35, %v980_v37 }
 0x2af   : > { %v1001_v41 = vmul.f32 %v999_v40, %v993_v38 }
 0x2b0   : > { %v1002_v42 = vmul.f32 %v999_v40, %v994_v39 }
 0x2b1   : > { %v1003_v43 = vadd.f32 %v1001_v41, %v2238_v55  ;;  %v1039_v55 = vld [vmem:[%s2440_s27] sm:$0x3] }
 0x2b2   : > { %v1004_v44 = vadd.f32 %v1002_v42, %v2195_v15  ;;  %v1025_v15 = vld [vmem:[%s2439_s11] sm:$0x3]  ;;  %v1044_v63 = vrot.slane %v1039_v55, %v2254_v7  ;;  %v1048_v0 = vrot.slane %v1039_v55, %v2261_v9 }
 0x2b3   : > { %v1010_v46 = vmul.f32 %v1003_v43, %v1003_v43  ;;  %v1030_v60 = vrot.slane %v1025_v15, %v2254_v7  ;;  %v1034_v61 = vrot.slane %v1025_v15, %v2261_v9 }
 0x2b4   : > { %v1005_v45 = vadd.f32 %v1004_v44, %v1003_v43  ;;  %v1011_v47 = vmul.f32 %v1004_v44, %v1004_v44 }
 0x2b6   : > { %1006 = vadd.xlane.f32.xlu0 %v1005_v45  ;;  %v1012_v48 = vadd.f32 %v1011_v47, %v1010_v46 }
 0x2b8   : > { %1013 = vadd.xlane.f32.xlu1 %v1012_v48 }
 0x343   : > { %v1007_v49 = vpop.xlane.xlu0 %1006 }
 0x344   : > { %v1009_v50 = vmul.f32 0.00390625, %v1007_v49 }
 0x345   : > { %v1014_v51 = vpop.xlane.xlu1 %1013 }
 0x346   : > { %v1015_v52 = vmul.f32 0.00390625, %v1014_v51  ;;  %v1016_v53 = vmul.f32 %v1009_v50, %v1009_v50  ;;  %v1019_v58 = vsub.f32 %v1003_v43, %v1009_v50  ;;  %v1020_v59 = vsub.f32 %v1004_v44, %v1009_v50 }
 0x348   : > { %v1017_v54 = vsub.f32 %v1015_v52, %v1016_v53 }
 0x34a   : > { %v1018_v56 = vmax.f32 %v1017_v54, 0.0 }
 0x34c   : > { %v1021_v57 = vadd.f32 1e-05, %v1018_v56 }
 0x34e   : > { %1563 = vrsqrt.f32 %v1021_v57 }
 0x358   : > { %v1564_v62 = vpop.eup %1563 }
 0x359   : > { %v1023_v1 = vmul.f32 %v1564_v62, %v1019_v58  ;;  %v1024_v2 = vmul.f32 %v1564_v62, %v1020_v59 }
 0x35b   : > { %v1037_v3 = vmul.f32 %v1030_v60, %v1023_v1  ;;  %v1038_v4 = vmul.f32 %v1034_v61, %v1024_v2 }
 0x35d   : > { %v1051_v5 = vadd.f32 %v1044_v63, %v1037_v3  ;;  %v1052_v6 = vadd.f32 %v1048_v0, %v1038_v4 }
 0x35f   : > { %1053 = vst [vmem:[%s2177_s0] sm:$0xff] %v1051_v5  ;;  %1054 = vst [vmem:[%s2177_s0 + $0x8] sm:$0xff] %v1052_v6 }
 0x360 PF: > { %s2441_s29 = sld [smem:[#allocation16_spill]]  ;;  %s2442_s12 = sld [smem:[#allocation17_spill]] }
 0x361   : > { %s2443_s8 = sld [smem:[#allocation24_spill]]  ;;  %s1072_s5 = sshll.u32 %s2177_s0, 4  ;;  %s2289_s5 = int_to_ptr.vmem [resolvable:$true] %s1072_s5 }
 0x362   : > { %s2444_s19 = sld [smem:[#allocation32_spill]]  ;;  %s1056_s22 = scalar_lea.sflag [#allocation5], %s2141_s28 }
 0x363   : > { %s1655_s1 = scalar_lea.vmem %s2289_s5, 256  ;;  %s1807_s2 = smov [#allocation9]  }
 0x364   : > { %p1656_p7 = scmp.ne.s32.totalorder %s2289_s5, %s1655_s1  ;;  %s1659_s18 = sshll.u32 %s1807_s2, 4  ;;  %s1660_s18 = int_to_ptr.vmem [resolvable:$false] %s1659_s18 }
 0x365   : > { %s1661_s0 = scalar_lea.vmem %s1660_s18, 512  ;;  %p1662_p11 = scmp.lt.s32.totalorder %s2289_s5, %s1660_s18 }
 0x366   : > { %s1325_s26 = sshll.u32 %s2441_s29, 1  ;;  %s1326_s24 = sshll.u32 %s2442_s12, 2 }
 0x367   : > { %s1068_s6 = sadd.s32 %s1326_s24, %s1325_s26  ;;  %p2445_p13 = scmp.ne.s32.totalorder %s2443_s8, 0 }
 0x368   : > { %s1327_s16 = sshll.u32 %s1068_s6, 7  ;;  %p1663_p2 = scmp.lt.s32.totalorder %s1661_s0, %s1655_s1 }
 0x369   : > { %s1070_s25 = scalar_lea.hbm %s2444_s19, %s1327_s16  ;;  %p1657_p5 = pnand %p1656_p7, %p2445_p13 }
 0x36a   : > { %p1664_p10 = por %p1663_p2, %p1662_p11 }
 0x36b   : > { %p1658_p12 = pneg %p1657_p5 }
 0x36d   : > { %p1665_p6 = pnand %p1664_p10, %p1658_p12 }
 0x36f   : > { %1668 = shalt.err (!%p1665_p6)
}
 0x370   : > { %s1669_s11 = scalar_lea.hbm %s1070_s25, 256  ;;  %s1673_s13 = scalar_lea.hbm %s2444_s19, 1024 }
 0x371   : > { %p1670_p4 = scmp.ne.s32.totalorder %s1070_s25, %s1669_s11  ;;  %p1674_p9 = scmp.lt.u32.totalorder %s1070_s25, %s2444_s19 }
 0x372   : > { %p1675_p8 = scmp.lt.u32.totalorder %s1673_s13, %s1669_s11  ;;  %p1677_p7 = scmp.lt.u32.totalorder %s1669_s11, %s1070_s25 }
 0x373   : > { %p1671_p3 = pnand %p1670_p4, %p2445_p13 }
 0x374   : > { %p1676_p0 = por %p1675_p8, %p1674_p9 }
 0x375   : > { %p1672_p1 = pneg %p1671_p3 }
 0x376   : > { %p1678_p5 = por %p1677_p7, %p1676_p0 }
 0x378   : > { %p1679_p12 = pnand %p1678_p5, %p1672_p1 }
 0x37a   : > { %1682 = shalt.err (!%p1679_p12)
}
 0x37b   : > { %1339 = dma.vmem_to_hbm [thread:$0]  (%p2445_p13), %s2289_s5, 256, %s1070_s25, %s1056_s22  }
 0x37c PF: > { %p1356_p11 = scmp.ge.s32.totalorder %s1797_s17, 2  ;;  %s1084_s12 = sand.u32 1, %s1761_s30  }
 0x37d   : > { %p2446_p2 = scmp.ne.s32.totalorder %s2418_s3, 0  ;;  %s1085_s26 = scalar_lea.sflag [#allocation5], %s1084_s12 }
 0x37f   : > { %p1352_p10 = pnand %p1356_p11, %p2446_p2 }
 0x381   : > { %1744 = dma.done.wait (!%p1352_p10), %s1085_s26, 256  }
 0x382   : > { %1746 = vsyncadd (!%p1352_p10), %s1085_s26, 4294967040  ;;  %s27_s17 = sadd.s32 1, %s1797_s17   ;;  %s2448_s27 = sld [smem:[#allocation13_spill]] }
 0x383   : > { %p2316_p6 = scmp.ge.s32.totalorder %s27_s17, 10   ;;  %s2449_s28 = sld [smem:[#allocation14_spill]] }
 0x384   : > { %s2450_s29 = sld [smem:[#allocation22_spill]]  ;;  %s2451_s13 = sld [smem:[#allocation18_spill]] }
 0x385   : > { %s2452_s3 = sld [smem:[#allocation19_spill]]  ;;  %s2453_s8 = sld [smem:[#allocation20_spill]] }
 0x386   : > { %s2454_s16 = sld [smem:[#allocation21_spill]]  ;;  %s2455_s30 = smov %s1765_s9 }
 0x387   : > { %s2456_s9 = smov %s1769_s10  ;;  %s2457_s10 = smov %s2049_s20 }
 0x388   : > { %s2458_s11 = smov %s1785_s14  ;;  %s2459_s12 = smov %s1789_s15 }
 0x389   :  { %26 = sbr.rel (!%p2316_p6) target bundleno = 21 (0x15), region = 135 }
 0x38b   : > { %s2460_s14 = smov %s2452_s3  ;;  %s2461_s15 = smov %s2453_s8 }
 0x390   :  { %1090 = vsyncpa [#allocation4], 1 }
 0x391   :  { %1092 = vsyncpa [#allocation4 + $0x1], 1 }
 0x392   :  { %1093 = vsyncpa [#allocation7], 1 }
 0x393   :  { %1095 = vsyncpa [#allocation7 + $0x1], 1 }
 0x394   :  { %1096 = vsyncpa [#allocation5], 1 }
 0x395   :  { %1098 = vsyncpa [#allocation5 + $0x1], 1 }

</bundles_post_ra>
